<compile_context>
chip_gen: v6e
topology: v6e:2x2x1
jax: 0.10.0
libtpu: 0.0.40
codegen_flags: <defaults>
</compile_context>

<pallas_src>
import functools

import jax
import jax.numpy as jnp
from jax.experimental import pallas as pl
from jax.experimental.pallas import tpu as pltpu

EPS = 1e-5

_MM_M_CANDS = (512, 256, 128)   # row tiles (>=128: bf16-safe, amortize step overhead)
_MM_K_CANDS = (512, 256, 128)   # K tiles (MXU aligned)
_MM_N_CANDS = (256, 128)        # lane-dense output-channel tiles
_ROW_CANDS = (512, 256, 128)    # row tiles for BN kernels
_VMEM_LIMIT = 48 * 1024 * 1024  # <= v7x physical 64 MiB; > 32 MiB default on v5e/v6e


def _round_up(x, m):
    return (x + m - 1) // m * m


def _pick_tile(dim, candidates):
    """Pick candidate tile minimizing padded size (ties -> largest tile)."""
    best_t, best_p = None, None
    for t in candidates:
        p = _round_up(dim, t)
        if best_p is None or p < best_p or (p == best_p and t > best_t):
            best_t, best_p = t, p
    return best_t, best_p


def _largest_divisor(dim, candidates):
    for t in candidates:
        if dim % t == 0:
            return t
    return candidates[-1]


def _cpad(c):
    return max(_round_up(c, 128), 128)


# ---------------------------------------------------------------------------
# Tiled bf16 matmul with f32 accumulator and fused per-channel BN statistics
# ---------------------------------------------------------------------------
def _matmul_stats_kernel(a_ref, b_ref, o_ref, st_ref, acc_ref):
    i = pl.program_id(1)            # M-tile index (reduction axis for stats)
    k = pl.program_id(2)            # K-tile index (reduction axis for matmul)
    nk = pl.num_programs(2)

    @pl.when(k == 0)
    def _init_acc():
        acc_ref[...] = jnp.zeros_like(acc_ref)

    @pl.when((i == 0) & (k == 0))
    def _init_stats():
        st_ref[...] = jnp.zeros_like(st_ref)

    acc_ref[...] += jnp.dot(a_ref[...], b_ref[...],
                            preferred_element_type=jnp.float32)

    @pl.when(k == nk - 1)
    def _epilogue():
        acc = acc_ref[...]
        o_ref[...] = acc.astype(o_ref.dtype)
        s = jnp.sum(acc, axis=0, keepdims=True)           # [1, tn]
        ss = jnp.sum(acc * acc, axis=0, keepdims=True)    # [1, tn]
        rows = jax.lax.broadcasted_iota(jnp.int32, st_ref.shape, 0)
        upd = (rows == 0).astype(jnp.float32) * s + (rows == 1).astype(jnp.float32) * ss
        st_ref[...] += upd


def pallas_matmul_stats(a, b, tm):
    """a: [Mp, Kp] bf16, b: [Kp, Np] bf16 -> (out [Mp, Np] bf16, stats [8, Np] f32).

    stats[0] = per-column sum of the f32 accumulator, stats[1] = sum of squares.
    Grid order is (N-tiles, M-tiles, K-tiles) so the (8, tn) stats block stays
    resident in VMEM across the whole M/K reduction for each N tile.
    """
    Mp, Kp = a.shape
    _, Np = b.shape
    tk = _largest_divisor(Kp, _MM_K_CANDS)
    tn = _largest_divisor(Np, _MM_N_CANDS)
    grid = (Np // tn, Mp // tm, Kp // tk)
    return pl.pallas_call(
        _matmul_stats_kernel,
        out_shape=(jax.ShapeDtypeStruct((Mp, Np), jnp.bfloat16),
                   jax.ShapeDtypeStruct((8, Np), jnp.float32)),
        grid_spec=pltpu.PrefetchScalarGridSpec(
            num_scalar_prefetch=0,
            grid=grid,
            in_specs=[pl.BlockSpec((tm, tk), lambda j, i, k: (i, k)),
                      pl.BlockSpec((tk, tn), lambda j, i, k: (k, j))],
            out_specs=[pl.BlockSpec((tm, tn), lambda j, i, k: (i, j)),
                       pl.BlockSpec((8, tn), lambda j, i, k: (0, j))],
            scratch_shapes=[pltpu.VMEM((tm, tn), jnp.float32)]),
        compiler_params=pltpu.CompilerParams(
            dimension_semantics=("parallel", "arbitrary", "arbitrary"),
            vmem_limit_bytes=_VMEM_LIMIT),
        cost_estimate=pl.CostEstimate(
            flops=2 * Mp * Np * Kp,
            transcendentals=0,
            bytes_accessed=Mp * Kp * 2 + Kp * Np * 2 + Mp * Np * 2 + 8 * Np * 4),
    )(a, b)


# ---------------------------------------------------------------------------
# BN scale/shift from fused stats (tiny per-channel plain-JAX math)
# ---------------------------------------------------------------------------
def _scale_shift(stats, gamma_p, beta_p, m_true):
    """Training-mode batch stats; zero-padded rows contribute 0 -> exact."""
    s, ss = stats[0], stats[1]
    mean = s / m_true
    var = jnp.maximum(ss / m_true - mean * mean, 0.0)
    scale = gamma_p * jax.lax.rsqrt(var + EPS)      # padded channels: gamma=0 -> 0
    shift = beta_p - mean * scale
    return scale.reshape(1, -1), shift.reshape(1, -1)


# ---------------------------------------------------------------------------
# Fused normalize(+shortcut-BN +add)+ReLU kernels (bf16 in, bf16 out)
# ---------------------------------------------------------------------------
def _bn_act_kernel(x_ref, s_ref, b_ref, o_ref, *, relu):
    y = x_ref[...].astype(jnp.float32) * s_ref[...] + b_ref[...]
    if relu:
        y = jnp.maximum(y, 0.0)
    o_ref[...] = y.astype(o_ref.dtype)


def pallas_bn_act(x2d, scale, shift, relu=True, out_dtype=jnp.bfloat16):
    Mp, C = x2d.shape
    tmr = _largest_divisor(Mp, _ROW_CANDS)
    return pl.pallas_call(
        functools.partial(_bn_act_kernel, relu=relu),
        out_shape=jax.ShapeDtypeStruct((Mp, C), out_dtype),
        grid=(Mp // tmr,),
        in_specs=[pl.BlockSpec((tmr, C), lambda r: (r, 0)),
                  pl.BlockSpec((1, C), lambda r: (0, 0)),
                  pl.BlockSpec((1, C), lambda r: (0, 0))],
        out_specs=pl.BlockSpec((tmr, C), lambda r: (r, 0)),
        compiler_params=pltpu.CompilerParams(
            dimension_semantics=("parallel",),
            vmem_limit_bytes=_VMEM_LIMIT),
    )(x2d, scale, shift)


def _bn_add_relu_kernel(x_ref, sc_ref, s1_ref, b1_ref, s2_ref, b2_ref, o_ref):
    # relu( BN_main(x) + BN_shortcut(sc) ); identity shortcut uses s2=1, b2=0.
    y = x_ref[...].astype(jnp.float32) * s1_ref[...] + b1_ref[...]
    z = sc_ref[...].astype(jnp.float32) * s2_ref[...] + b2_ref[...]
    o_ref[...] = jnp.maximum(y + z, 0.0).astype(o_ref.dtype)


def pallas_bn_add_relu(x2d, sc2d, s1, b1, s2, b2, out_dtype=jnp.bfloat16):
    Mp, C = x2d.shape
    tmr = _largest_divisor(Mp, _ROW_CANDS)
    return pl.pallas_call(
        _bn_add_relu_kernel,
        out_shape=jax.ShapeDtypeStruct((Mp, C), out_dtype),
        grid=(Mp // tmr,),
        in_specs=[pl.BlockSpec((tmr, C), lambda r: (r, 0)),
                  pl.BlockSpec((tmr, C), lambda r: (r, 0)),
                  pl.BlockSpec((1, C), lambda r: (0, 0)),
                  pl.BlockSpec((1, C), lambda r: (0, 0)),
                  pl.BlockSpec((1, C), lambda r: (0, 0)),
                  pl.BlockSpec((1, C), lambda r: (0, 0))],
        out_specs=pl.BlockSpec((tmr, C), lambda r: (r, 0)),
        compiler_params=pltpu.CompilerParams(
            dimension_semantics=("parallel",),
            vmem_limit_bytes=_VMEM_LIMIT),
    )(x2d, sc2d, s1, b1, s2, b2)


# ---------------------------------------------------------------------------
# Fused global average pool + Linear (pool expressed as a 0/1 matrix -> 2 MXU dots)
# ---------------------------------------------------------------------------
def _pool_linear_kernel(p_ref, x_ref, w_ref, b_ref, o_ref, *, inv_hw):
    pooled = jnp.dot(p_ref[...], x_ref[...],
                     preferred_element_type=jnp.float32) * inv_hw       # [Nb, C]
    o_ref[...] = jnp.dot(pooled.astype(jnp.bfloat16), w_ref[...],
                         preferred_element_type=jnp.float32) + b_ref[...]


def pallas_pool_linear(x2d, pool_mat, w, b, inv_hw):
    Mp, C = x2d.shape
    Nb = pool_mat.shape[0]
    NCp = w.shape[1]
    return pl.pallas_call(
        functools.partial(_pool_linear_kernel, inv_hw=inv_hw),
        out_shape=jax.ShapeDtypeStruct((Nb, NCp), jnp.float32),
        grid=(1,),
        in_specs=[pl.BlockSpec((Nb, Mp), lambda i: (0, 0)),
                  pl.BlockSpec((Mp, C), lambda i: (0, 0)),
                  pl.BlockSpec((C, NCp), lambda i: (0, 0)),
                  pl.BlockSpec((1, NCp), lambda i: (0, 0))],
        out_specs=pl.BlockSpec((Nb, NCp), lambda i: (0, 0)),
        compiler_params=pltpu.CompilerParams(
            dimension_semantics=("arbitrary",),
            vmem_limit_bytes=_VMEM_LIMIT),
    )(pool_mat, x2d, w, b)


# ---------------------------------------------------------------------------
# Convolution glue: bf16 im2col + padding (plain JAX), matmul+stats in Pallas
# ---------------------------------------------------------------------------
def _im2col_3x3(x, stride):
    # x: [N, H, W, C] bf16, kernel 3x3, padding 1.
    N, H, W, C = x.shape
    Ho = (H - 1) // stride + 1
    Wo = (W - 1) // stride + 1
    xp = jnp.pad(x, ((0, 0), (1, 1), (1, 1), (0, 0)))
    cols = []
    for ky in range(3):
        for kx in range(3):
            cols.append(xp[:, ky:ky + stride * (Ho - 1) + 1:stride,
                             kx:kx + stride * (Wo - 1) + 1:stride, :])
    patches = jnp.stack(cols, axis=3)                         # [N,Ho,Wo,9,C]
    return patches.reshape(N * Ho * Wo, 9 * C), (N, Ho, Wo)


def conv3x3_nhwc(x, w_pad, stride):
    patches, (N, Ho, Wo) = _im2col_3x3(x, stride)
    M, K = patches.shape
    Kp = w_pad.shape[0]
    tm, Mp = _pick_tile(M, _MM_M_CANDS)
    patches = jnp.pad(patches, ((0, Mp - M), (0, Kp - K)))
    out, stats = pallas_matmul_stats(patches, w_pad, tm)      # bf16 [Mp, Cout_p]
    return out, stats, (N, Ho, Wo), M


def conv3x3_from_act(act, w_pad, stride):
    x2d, N, H, W, M = act
    C = x2d.shape[1]
    x = x2d[:M].reshape(N, H, W, C)   # TODO(synk): stream taps via in-kernel DMA instead
    return conv3x3_nhwc(x, w_pad, stride)


def conv1x1_from_act(act, w_pad, stride):
    x2d, N, H, W, M = act
    C = x2d.shape[1]
    x = x2d[:M].reshape(N, H, W, C)
    xs = x[:, ::stride, ::stride, :]
    Nn, Ho, Wo, _ = xs.shape
    Mo = Nn * Ho * Wo
    Kp = w_pad.shape[0]
    tm, Mp = _pick_tile(Mo, _MM_M_CANDS)
    a = jnp.pad(xs.reshape(Mo, C), ((0, Mp - Mo), (0, Kp - C)))
    out, stats = pallas_matmul_stats(a, w_pad, tm)
    return out, stats, (Nn, Ho, Wo), Mo


# ---------------------------------------------------------------------------
# Parameter construction (He-style init; bf16 weights, channel/K padded for TPU)
# ---------------------------------------------------------------------------
def _conv3x3_weight(key, cin_real, cin_p, cout_real):
    cout_p = _cpad(cout_real)
    K = 9 * cin_p
    _, Kp = _pick_tile(K, _MM_K_CANDS)
    w = jax.random.normal(key, (cout_real, cin_real, 3, 3), jnp.float32) \
        * jnp.sqrt(2.0 / (9 * cin_real))
    w = jnp.transpose(w, (2, 3, 1, 0))                        # (ky,kx,cin,cout)
    w = jnp.pad(w, ((0, 0), (0, 0), (0, cin_p - cin_real), (0, cout_p - cout_real)))
    wm = w.reshape(K, cout_p)
    return jnp.pad(wm, ((0, Kp - K), (0, 0))).astype(jnp.bfloat16)


def _conv1x1_weight(key, cin_real, cin_p, cout_real):
    cout_p = _cpad(cout_real)
    _, Kp = _pick_tile(cin_p, _MM_K_CANDS)
    w = jax.random.normal(key, (cout_real, cin_real, 1, 1), jnp.float32) \
        * jnp.sqrt(2.0 / cin_real)
    w = jnp.transpose(w, (2, 3, 1, 0)).reshape(cin_real, cout_real)
    w = jnp.pad(w, ((0, cin_p - cin_real), (0, cout_p - cout_real)))
    return jnp.pad(w, ((0, Kp - cin_p), (0, 0))).astype(jnp.bfloat16)


def _bn_params(c):
    cp = _cpad(c)
    gamma = jnp.pad(jnp.ones((c,), jnp.float32), (0, cp - c))   # padded channels: 0
    beta = jnp.zeros((cp,), jnp.float32)
    return gamma, beta


def init_params(key, num_blocks=(1, 1, 1, 1), num_classes=10, in_ch=3):
    params = {"num_classes": num_classes}
    key, k = jax.random.split(key)
    params["conv1"] = _conv3x3_weight(k, in_ch, in_ch, 64)
    params["bn1"] = _bn_params(64)
    in_planes = 64
    layers = []
    for planes, nb, stride0 in zip((64, 128, 256, 512), num_blocks, (1, 2, 2, 2)):
        blocks = []
        for s in [stride0] + [1] * (nb - 1):
            key, k1, k2, k3 = jax.random.split(key, 4)
            blk = {
                "conv1": _conv3x3_weight(k1, in_planes, _cpad(in_planes), planes),
                "bn1": _bn_params(planes),
                "conv2": _conv3x3_weight(k2, planes, _cpad(planes), planes),
                "bn2": _bn_params(planes),
                "stride": s,
            }
            if s != 1 or in_planes != planes:
                blk["sc_conv"] = _conv1x1_weight(k3, in_planes, _cpad(in_planes), planes)
                blk["sc_bn"] = _bn_params(planes)
            blocks.append(blk)
            in_planes = planes
        layers.append(blocks)
    params["layers"] = layers
    key, k = jax.random.split(key)
    NCp = _cpad(num_classes)                                   # lane-dense logits
    wl = jax.random.normal(k, (512, num_classes), jnp.float32) * jnp.sqrt(1.0 / 512)
    wl = jnp.pad(wl, ((0, 0), (0, NCp - num_classes))).astype(jnp.bfloat16)
    params["linear"] = (wl, jnp.zeros((1, NCp), jnp.float32))
    return params


# ---------------------------------------------------------------------------
# Forward pass (activations carried as padded 2-D bf16: (x2d[Mp,Cp], N, H, W, M))
# ---------------------------------------------------------------------------
def basic_block(act_in, blk):
    s = blk["stride"]
    out1, st1, (N, Ho, Wo), M1 = conv3x3_from_act(act_in, blk["conv1"], s)
    sc1, sh1 = _scale_shift(st1, *blk["bn1"], M1)
    a1 = pallas_bn_act(out1, sc1, sh1, relu=True)              # bf16 [Mp, planes_p]
    act1 = (a1, N, Ho, Wo, M1)

    out2, st2, _, M2 = conv3x3_from_act(act1, blk["conv2"], 1)
    sc2, sh2 = _scale_shift(st2, *blk["bn2"], M2)

    if "sc_conv" in blk:
        scv, st3, _, _ = conv1x1_from_act(act_in, blk["sc_conv"], s)
        s3, b3 = _scale_shift(st3, *blk["sc_bn"], M2)
        shortcut = scv
    else:
        # Identity shortcut: same padded [Mp, Cp] layout -> feed directly, no copy.
        shortcut = act_in[0]
        Cp = shortcut.shape[1]
        s3 = jnp.ones((1, Cp), jnp.float32)
        b3 = jnp.zeros((1, Cp), jnp.float32)

    out = pallas_bn_add_relu(out2, shortcut, sc2, sh2, s3, b3)
    return (out, N, Ho, Wo, M2)


def resnet_forward(params, x_nchw):
    x = jnp.transpose(x_nchw, (0, 2, 3, 1)).astype(jnp.bfloat16)   # NCHW -> NHWC bf16
    out, st, (N, Ho, Wo), M = conv3x3_nhwc(x, params["conv1"], 1)
    sc, sh = _scale_shift(st, *params["bn1"], M)
    out = pallas_bn_act(out, sc, sh, relu=True)
    act = (out, N, Ho, Wo, M)
    for blocks in params["layers"]:
        for blk in blocks:
            act = basic_block(act, blk)

    x2d, N, H, W, M = act
    HW = H * W
    Mp = x2d.shape[0]
    Nb = _round_up(max(N, 1), 16)
    rows = jnp.arange(Mp)
    pmat = ((rows[None, :] // HW == jnp.arange(Nb)[:, None]) &
            (rows[None, :] < M)).astype(jnp.bfloat16)          # [Nb, Mp] pooling matrix
    wl, bl = params["linear"]
    logits = pallas_pool_linear(x2d, pmat, wl, bl, 1.0 / HW)   # [Nb, NCp] f32
    return logits[:N, :params["num_classes"]]


if __name__ == "__main__":
    key = jax.random.PRNGKey(0)
    pkey, xkey = jax.random.split(key)
    params = init_params(pkey, num_blocks=(1, 1, 1, 1), num_classes=10, in_ch=3)
    x = jax.random.normal(xkey, (2, 3, 16, 16), jnp.float32)   # NCHW like PyTorch
    out = resnet_forward(params, x)
    out = jax.block_until_ready(out)
    assert out.shape == (2, 10) and out.dtype == jnp.float32
    assert bool(jnp.all(jnp.isfinite(out)))
    print("KERNEL_OK")
</pallas_src>

<mosaic_0001>
module attributes {stable_mosaic.version = 11 : i64} {
  func.func @_matmul_stats_kernel(%arg0: i32, %arg1: i32, %arg2: i32, %arg3: memref<512x128xbf16, #tpu.memory_space<vmem>>, %arg4: memref<128x128xbf16, #tpu.memory_space<vmem>>, %arg5: memref<512x128xbf16, #tpu.memory_space<vmem>>, %arg6: memref<8x128xf32, #tpu.memory_space<vmem>>, %arg7: memref<512x128xf32, #tpu.memory_space<vmem>>) attributes {dimension_semantics = [#tpu.dimension_semantics<parallel>, #tpu.dimension_semantics<arbitrary>, #tpu.dimension_semantics<arbitrary>], iteration_bounds = array<i64: 1, 1, 1>, scalar_prefetch = 0 : i64, scratch_operands = 1 : i64, tpu.core_type = #tpu.core_type<tc>, window_params = [{transform_indices = @transform_0, window_bounds = array<i64: 512, 128>}, {transform_indices = @transform_1, window_bounds = array<i64: 128, 128>}, {transform_indices = @transform_2, window_bounds = array<i64: 512, 128>}, {transform_indices = @transform_3, window_bounds = array<i64: 8, 128>}]} {
    %c0_i32 = arith.constant 0 : i32
    %0 = arith.cmpi eq, %arg2, %c0_i32 : i32
    %1 = arith.extui %0 : i1 to i32
    %c0_i32_0 = arith.constant 0 : i32
    %2 = arith.cmpi ne, %1, %c0_i32_0 : i32
    scf.if %2 {
      %cst_13 = arith.constant 0.000000e+00 : f32
      %17 = vector.broadcast %cst_13 : f32 to vector<512x128xf32>
      %c0_14 = arith.constant 0 : index
      %c0_15 = arith.constant 0 : index
      %18 = vector.load %arg7[%c0_14, %c0_15] : memref<512x128xf32, #tpu.memory_space<vmem>>, vector<512x128xf32>
      tpu.vector_store %arg7[%c0_14, %c0_15], %17 {strides = array<i32>} : memref<512x128xf32, #tpu.memory_space<vmem>>, vector<512x128xf32>,
    } else {
    }
    %c0_i32_1 = arith.constant 0 : i32
    %3 = arith.cmpi eq, %arg1, %c0_i32_1 : i32
    %c0_i32_2 = arith.constant 0 : i32
    %4 = arith.cmpi eq, %arg2, %c0_i32_2 : i32
    %5 = arith.andi %3, %4 : i1
    %6 = arith.extui %5 : i1 to i32
    %c0_i32_3 = arith.constant 0 : i32
    %7 = arith.cmpi ne, %6, %c0_i32_3 : i32
    scf.if %7 {
      %cst_13 = arith.constant 0.000000e+00 : f32
      %17 = vector.broadcast %cst_13 : f32 to vector<8x128xf32>
      %c0_14 = arith.constant 0 : index
      %c0_15 = arith.constant 0 : index
      %18 = vector.load %arg6[%c0_14, %c0_15] : memref<8x128xf32, #tpu.memory_space<vmem>>, vector<8x128xf32>
      tpu.vector_store %arg6[%c0_14, %c0_15], %17 {strides = array<i32>} : memref<8x128xf32, #tpu.memory_space<vmem>>, vector<8x128xf32>,
    } else {
    }
    %c0 = arith.constant 0 : index
    %c0_4 = arith.constant 0 : index
    %8 = vector.load %arg7[%c0, %c0_4] : memref<512x128xf32, #tpu.memory_space<vmem>>, vector<512x128xf32>
    %c0_5 = arith.constant 0 : index
    %c0_6 = arith.constant 0 : index
    %9 = vector.load %arg3[%c0_5, %c0_6] : memref<512x128xbf16, #tpu.memory_space<vmem>>, vector<512x128xbf16>
    %c0_7 = arith.constant 0 : index
    %c0_8 = arith.constant 0 : index
    %10 = vector.load %arg4[%c0_7, %c0_8] : memref<128x128xbf16, #tpu.memory_space<vmem>>, vector<128x128xbf16>
    %cst = arith.constant dense<0.000000e+00> : vector<512x128xf32>
    %11 = tpu.matmul %9, %10, %cst {dimension_numbers = #tpu.dot_dimension_numbers<[1], [0], [0], [1], [0, 0, 1, 1], [], []>} : vector<512x128xbf16>, vector<128x128xbf16>, vector<512x128xf32> -> vector<512x128xf32>
    %12 = arith.addf %8, %11 : vector<512x128xf32>
    %c0_9 = arith.constant 0 : index
    %c0_10 = arith.constant 0 : index
    %13 = vector.load %arg7[%c0_9, %c0_10] : memref<512x128xf32, #tpu.memory_space<vmem>>, vector<512x128xf32>
    tpu.vector_store %arg7[%c0_9, %c0_10], %12 {strides = array<i32>} : memref<512x128xf32, #tpu.memory_space<vmem>>, vector<512x128xf32>,
    %c0_i32_11 = arith.constant 0 : i32
    %14 = arith.cmpi eq, %arg2, %c0_i32_11 : i32
    %15 = arith.extui %14 : i1 to i32
    %c0_i32_12 = arith.constant 0 : i32
    %16 = arith.cmpi ne, %15, %c0_i32_12 : i32
    scf.if %16 {
      %c0_13 = arith.constant 0 : index
      %c0_14 = arith.constant 0 : index
      %17 = vector.load %arg7[%c0_13, %c0_14] : memref<512x128xf32, #tpu.memory_space<vmem>>, vector<512x128xf32>
      %18 = arith.truncf %17 : vector<512x128xf32> to vector<512x128xbf16>
      %c0_15 = arith.constant 0 : index
      %c0_16 = arith.constant 0 : index
      %19 = vector.load %arg5[%c0_15, %c0_16] : memref<512x128xbf16, #tpu.memory_space<vmem>>, vector<512x128xbf16>
      tpu.vector_store %arg5[%c0_15, %c0_16], %18 {strides = array<i32>} : memref<512x128xbf16, #tpu.memory_space<vmem>>, vector<512x128xbf16>,
      %cst_17 = arith.constant dense<0.000000e+00> : vector<128xf32>
      %20 = vector.multi_reduction <add>, %17, %cst_17 [0] : vector<512x128xf32> to vector<128xf32>
      %21 = vector.shape_cast %20 : vector<128xf32> to vector<1x128xf32>
      %22 = arith.mulf %17, %17 : vector<512x128xf32>
      %cst_18 = arith.constant dense<0.000000e+00> : vector<128xf32>
      %23 = vector.multi_reduction <add>, %22, %cst_18 [0] : vector<512x128xf32> to vector<128xf32>
      %24 = vector.shape_cast %23 : vector<128xf32> to vector<1x128xf32>
      %25 = tpu.iota {dimensions = array<i32: 0>} : vector<8x128xi32>
      %c0_i32_19 = arith.constant 0 : i32
      %26 = vector.broadcast %c0_i32_19 : i32 to vector<8x128xi32>
      %27 = arith.cmpi eq, %25, %26 : vector<8x128xi32>
      %28 = arith.extui %27 : vector<8x128xi1> to vector<8x128xi32>
      %29 = arith.sitofp %28 : vector<8x128xi32> to vector<8x128xf32>
      %30 = vector.broadcast %21 : vector<1x128xf32> to vector<8x128xf32>
      %31 = arith.mulf %29, %30 : vector<8x128xf32>
      %c1_i32 = arith.constant 1 : i32
      %32 = vector.broadcast %c1_i32 : i32 to vector<8x128xi32>
      %33 = arith.cmpi eq, %25, %32 : vector<8x128xi32>
      %34 = arith.extui %33 : vector<8x128xi1> to vector<8x128xi32>
      %35 = arith.sitofp %34 : vector<8x128xi32> to vector<8x128xf32>
      %36 = vector.broadcast %24 : vector<1x128xf32> to vector<8x128xf32>
      %37 = arith.mulf %35, %36 : vector<8x128xf32>
      %38 = arith.addf %31, %37 : vector<8x128xf32>
      %c0_20 = arith.constant 0 : index
      %c0_21 = arith.constant 0 : index
      %39 = vector.load %arg6[%c0_20, %c0_21] : memref<8x128xf32, #tpu.memory_space<vmem>>, vector<8x128xf32>
      %40 = arith.addf %39, %38 : vector<8x128xf32>
      %c0_22 = arith.constant 0 : index
      %c0_23 = arith.constant 0 : index
      %41 = vector.load %arg6[%c0_22, %c0_23] : memref<8x128xf32, #tpu.memory_space<vmem>>, vector<8x128xf32>
      tpu.vector_store %arg6[%c0_22, %c0_23], %40 {strides = array<i32>} : memref<8x128xf32, #tpu.memory_space<vmem>>, vector<8x128xf32>,
    } else {
    }
    return
  }
  func.func @transform_0(%arg0: i32, %arg1: i32, %arg2: i32) -> (i32, i32) {
    %c0_i32 = arith.constant 0 : i32
    return %arg1, %arg2 : i32, i32
  }
  func.func @transform_1(%arg0: i32, %arg1: i32, %arg2: i32) -> (i32, i32) {
    %c0_i32 = arith.constant 0 : i32
    return %arg2, %arg0 : i32, i32
  }
  func.func @transform_2(%arg0: i32, %arg1: i32, %arg2: i32) -> (i32, i32) {
    %c0_i32 = arith.constant 0 : i32
    return %arg1, %arg0 : i32, i32
  }
  func.func @transform_3(%arg0: i32, %arg1: i32, %arg2: i32) -> (i32, i32) {
    %c0_i32 = arith.constant 0 : i32
    %c0_i32_0 = arith.constant 0 : i32
    return %c0_i32, %arg0 : i32, i32
  }
}

</mosaic_0001>

<bundles_post_ra>
// kernel: tpu_custom_call.1
= control target key start
LH: loop header
LB: loop body
LE: loop exit
PB: predicated region body
PF: predicated region fallthrough
CT: control target
= control target key end

     0   :  { %9 = vsyncpa [#allocation4], 0  ;;  %s2426_s0 = inlined_call_operand.hbm [shape: bf16[512,128], index: 0, kind: input, shape index: {}]   ;;  %s2427_s1 = inlined_call_operand.hbm [shape: bf16[128,128], index: 1, kind: input, shape index: {}]   ;;  %s2428_s2 = inlined_call_operand.hbm [shape: bf16[512,128], index: 2, kind: output, shape index: {0}]   ;;  %s2429_s3 = inlined_call_operand.hbm [shape: f32[8,128], index: 3, kind: output, shape index: {1}]  }
   0x1   :  { %10 = vsyncpa [#allocation7], 0 }
   0x2   :  { %11 = vsyncpa [#allocation5], 0 }
   0x3   :  { %12 = vsyncpa [#allocation10], 0  ;;  %s2186_s12 = smov [#allocation3]  }
   0x4   :  { %s18_s13 = sshll.u32 %s2186_s12, 4  ;;  %s19_s13 = int_to_ptr.vmem [resolvable:$true] %s18_s13 }
   0x5   :  { %s2106_s14 = scalar_lea.vmem %s19_s13, 4096  ;;  %p2111_p1 = scmp.lt.s32.totalorder %s19_s13, %s19_s13 }
   0x6   :  { %p2107_p0 = scmp.ne.s32.totalorder %s19_s13, %s2106_s14  ;;  %p2112_p2 = scmp.lt.s32.totalorder %s2106_s14, %s2106_s14 }
   0x8   :  { %p2113_p3 = por %p2112_p2, %p2111_p1 }
   0xa   :  { %p2114_p4 = pnand %p2113_p3, %p2107_p0 }
   0xc   :  { %2117 = shalt.err (!%p2114_p4)
}
   0xd   :  { %s2187_s15 = smov 64   ;;  %s2188_s16 = smov 4  }
   0xe   :  { %24 = dma.hbm_to_vmem [thread:$0]  %s2426_s0, 4096, %s19_s13, [#allocation4], %s2187_s15, %s2187_s15, %s2188_s16  }
   0xf   :  { %s2189_s19 = smov [#allocation6]  }
  0x10   :  { %s30_s20 = sshll.u32 %s2189_s19, 4  ;;  %s31_s20 = int_to_ptr.vmem [resolvable:$true] %s30_s20 }
  0x11   :  { %s2126_s21 = scalar_lea.vmem %s31_s20, 1024  ;;  %p2131_p6 = scmp.lt.s32.totalorder %s31_s20, %s31_s20 }
  0x12   :  { %p2127_p5 = scmp.ne.s32.totalorder %s31_s20, %s2126_s21  ;;  %p2132_p7 = scmp.lt.s32.totalorder %s2126_s21, %s2126_s21 }
  0x14   :  { %p2133_p8 = por %p2132_p7, %p2131_p6 }
  0x16   :  { %p2134_p9 = pnand %p2133_p8, %p2127_p5 }
  0x18   :  { %2137 = shalt.err (!%p2134_p9)
}
  0x19   :  { %36 = dma.hbm_to_vmem [thread:$0]  %s2427_s1, 1024, %s31_s20, [#allocation7], %s2187_s15, %s2187_s15, %s2188_s16  }
  0x1a   :  { %2178 = dma.done.wait [#allocation4], 4096  }
  0x1b   :  { %2179 = vsyncadd [#allocation4], 4294963200 }
  0x1c   :  { %2180 = dma.done.wait [#allocation7], 1024  }
  0x1d   :  { %2181 = vsyncadd [#allocation7], 4294966272  ;;  %v2058_v0 = vld [vmem:[#allocation6 + $0x38] sm:$0xff]   ;;  %v2059_v1 = vld [vmem:[#allocation6 + $0x30] sm:$0xff]   ;;  %s2190_s0 = smov [#allocation8]  }
  0x1e   :  { %1955 = vmatprep.subr.bf16.mxu0 %v2058_v0  ;;  %2035 = vmatprep.subr.bf16.mxu1 %v2058_v0  ;;  %v2060_v2 = vld [vmem:[#allocation6 + $0x28] sm:$0xff]   ;;  %v2061_v3 = vld [vmem:[#allocation6 + $0x20] sm:$0xff]   ;;  %v2062_v5 = vld [vmem:[#allocation6 + $0x18] sm:$0xff]   ;;  %s1527_s1 = sshll.u32 %s2190_s0, 4  ;;  %s1528_s1 = int_to_ptr.vmem [resolvable:$true] %s1527_s1 }
  0x1f   :  { %1956 = vmatpush3.bf16.msra.mxu0 %v2058_v0  ;;  %2043 = vmatpush3.bf16.msra.mxu1 %v2058_v0  ;;  %v2066_v4 = vld [vmem:[#allocation3] sm:$0xff]   ;;  %v2063_v6 = vld [vmem:[#allocation6 + $0x10] sm:$0xff]   ;;  %v2064_v7 = vld [vmem:[#allocation6 + $0x8] sm:$0xff]   ;;  %s2138_s24 = scalar_lea.vmem %s1528_s1, 4096  ;;  %p2143_p11 = scmp.lt.s32.totalorder %s1528_s1, %s1528_s1 }
  0x20   :  { %1957 = vmatprep.subr.bf16.mxu0 %v2059_v1  ;;  %2036 = vmatprep.subr.bf16.mxu1 %v2059_v1  ;;  %v2065_v8 = vld [vmem:[#allocation6] sm:$0xff]   ;;  %v2067_v10 = vld [vmem:[#allocation3 + $0x8] sm:$0xff]   ;;  %v2068_v11 = vld [vmem:[#allocation3 + $0x10] sm:$0xff]   ;;  %p2139_p10 = scmp.ne.s32.totalorder %s1528_s1, %s2138_s24  ;;  %p2144_p12 = scmp.lt.s32.totalorder %s2138_s24, %s2138_s24 }
  0x21   :  { %1971 = vmatprep.mubr.bf16.mxu0 %v2066_v4  ;;  %v2082_v9 = vld [vmem:[#allocation3 + $0x80] sm:$0xff]   ;;  %v2083_v12 = vld [vmem:[#allocation3 + $0x88] sm:$0xff]   ;;  %v2084_v13 = vld [vmem:[#allocation3 + $0x90] sm:$0xff]  }
  0x22   :  { %2003 = vmatprep.mubr.bf16.mxu1 %v2082_v9  ;;  %v2069_v14 = vld [vmem:[#allocation3 + $0x18] sm:$0xff]   ;;  %v2070_v15 = vld [vmem:[#allocation3 + $0x20] sm:$0xff]   ;;  %v2071_v18 = vld [vmem:[#allocation3 + $0x28] sm:$0xff]   ;;  %p2145_p13 = por %p2144_p12, %p2143_p11 }
  0x23   :  { %1958 = vmatpush3.bf16.msra.mxu0 %v2059_v1  ;;  %2044 = vmatpush3.bf16.msra.mxu1 %v2059_v1  ;;  %v2085_v16 = vld [vmem:[#allocation3 + $0x98] sm:$0xff]   ;;  %v2086_v17 = vld [vmem:[#allocation3 + $0xa0] sm:$0xff]   ;;  %v2087_v19 = vld [vmem:[#allocation3 + $0xa8] sm:$0xff]  }
  0x24   :  { %1959 = vmatprep.subr.bf16.mxu0 %v2060_v2  ;;  %2037 = vmatprep.subr.bf16.mxu1 %v2060_v2  ;;  %v2072_v20 = vld [vmem:[#allocation3 + $0x30] sm:$0xff]   ;;  %v2073_v22 = vld [vmem:[#allocation3 + $0x38] sm:$0xff]   ;;  %v2074_v24 = vld [vmem:[#allocation3 + $0x40] sm:$0xff]   ;;  %p2146_p0 = pnand %p2145_p13, %p2139_p10 }
  0x25   :  { %v2088_v21 = vld [vmem:[#allocation3 + $0xb0] sm:$0xff]   ;;  %v2089_v23 = vld [vmem:[#allocation3 + $0xb8] sm:$0xff]   ;;  %v2090_v25 = vld [vmem:[#allocation3 + $0xc0] sm:$0xff]  }
  0x26   :  { %v2075_v26 = vld [vmem:[#allocation3 + $0x48] sm:$0xff]   ;;  %v2076_v28 = vld [vmem:[#allocation3 + $0x50] sm:$0xff]   ;;  %v2077_v30 = vld [vmem:[#allocation3 + $0x58] sm:$0xff]  }
  0x27   :  { %1960 = vmatpush3.bf16.msra.mxu0 %v2060_v2  ;;  %2045 = vmatpush3.bf16.msra.mxu1 %v2060_v2  ;;  %v2091_v27 = vld [vmem:[#allocation3 + $0xc8] sm:$0xff]   ;;  %v2092_v29 = vld [vmem:[#allocation3 + $0xd0] sm:$0xff]   ;;  %v2093_v31 = vld [vmem:[#allocation3 + $0xd8] sm:$0xff]  }
  0x28   :  { %1961 = vmatprep.subr.bf16.mxu0 %v2061_v3  ;;  %2038 = vmatprep.subr.bf16.mxu1 %v2061_v3  ;;  %v2078_v32 = vld [vmem:[#allocation3 + $0x60] sm:$0xff]   ;;  %v2079_v34 = vld [vmem:[#allocation3 + $0x68] sm:$0xff]   ;;  %v2080_v36 = vld [vmem:[#allocation3 + $0x70] sm:$0xff]  }
  0x29   :  { %v2094_v33 = vld [vmem:[#allocation3 + $0xe0] sm:$0xff]   ;;  %v2095_v35 = vld [vmem:[#allocation3 + $0xe8] sm:$0xff]   ;;  %v2096_v37 = vld [vmem:[#allocation3 + $0xf0] sm:$0xff]  }
  0x2a   :  { %v2081_v38 = vld [vmem:[#allocation3 + $0x78] sm:$0xff]  }
  0x2b   :  { %1962 = vmatpush3.bf16.msra.mxu0 %v2061_v3  ;;  %2046 = vmatpush3.bf16.msra.mxu1 %v2061_v3  ;;  %v2097_v39 = vld [vmem:[#allocation3 + $0xf8] sm:$0xff]  }
  0x2c   :  { %1963 = vmatprep.subr.bf16.mxu0 %v2062_v5  ;;  %2039 = vmatprep.subr.bf16.mxu1 %v2062_v5 }
  0x2f   :  { %1964 = vmatpush3.bf16.msra.mxu0 %v2062_v5  ;;  %2047 = vmatpush3.bf16.msra.mxu1 %v2062_v5 }
  0x30   :  { %1965 = vmatprep.subr.bf16.mxu0 %v2063_v6  ;;  %2040 = vmatprep.subr.bf16.mxu1 %v2063_v6 }
  0x33   :  { %1966 = vmatpush3.bf16.msra.mxu0 %v2063_v6  ;;  %2048 = vmatpush3.bf16.msra.mxu1 %v2063_v6 }
  0x34   :  { %1967 = vmatprep.subr.bf16.mxu0 %v2064_v7  ;;  %2041 = vmatprep.subr.bf16.mxu1 %v2064_v7 }
  0x37   :  { %1968 = vmatpush3.bf16.msra.mxu0 %v2064_v7  ;;  %2049 = vmatpush3.bf16.msra.mxu1 %v2064_v7 }
  0x38   :  { %1969 = vmatprep.subr.bf16.mxu0 %v2065_v8  ;;  %2042 = vmatprep.subr.bf16.mxu1 %v2065_v8 }
  0x3b   :  { %1970 = vmatpush3.bf16.msra.mxu0 %v2065_v8  ;;  %2050 = vmatpush3.bf16.msra.mxu1 %v2065_v8 }
  0x3e   :  { %1972 = vmatmul.mubr.bf16.vlgmr.msra.gmra.mxu0 %v2067_v10  ;;  %2004 = vmatmul.mubr.bf16.vlgmr.msra.gmra.mxu1 %v2083_v12 }
  0x3f   :  { %1975 = vmatprep.mubr.bf16.mxu0 %v2068_v11  ;;  %2007 = vmatprep.mubr.bf16.mxu1 %v2084_v13 }
  0x46   :  { %1976 = vmatmul.mubr.bf16.gmra.mxu0 %v2069_v14  ;;  %2008 = vmatmul.mubr.bf16.gmra.mxu1 %v2085_v16 }
  0x47   :  { %1979 = vmatprep.mubr.bf16.mxu0 %v2070_v15  ;;  %2011 = vmatprep.mubr.bf16.mxu1 %v2086_v17 }
  0x4e   :  { %1980 = vmatmul.mubr.bf16.gmra.mxu0 %v2071_v18  ;;  %2012 = vmatmul.mubr.bf16.gmra.mxu1 %v2087_v19 }
  0x4f   :  { %1983 = vmatprep.mubr.bf16.mxu0 %v2072_v20  ;;  %2015 = vmatprep.mubr.bf16.mxu1 %v2088_v21 }
  0x56   :  { %1984 = vmatmul.mubr.bf16.gmra.mxu0 %v2073_v22  ;;  %2016 = vmatmul.mubr.bf16.gmra.mxu1 %v2089_v23 }
  0x57   :  { %1987 = vmatprep.mubr.bf16.mxu0 %v2074_v24  ;;  %2019 = vmatprep.mubr.bf16.mxu1 %v2090_v25 }
  0x5e   :  { %1988 = vmatmul.mubr.bf16.gmra.mxu0 %v2075_v26  ;;  %2020 = vmatmul.mubr.bf16.gmra.mxu1 %v2091_v27 }
  0x5f   :  { %1991 = vmatprep.mubr.bf16.mxu0 %v2076_v28  ;;  %2023 = vmatprep.mubr.bf16.mxu1 %v2092_v29 }
  0x66   :  { %1992 = vmatmul.mubr.bf16.gmra.mxu0 %v2077_v30  ;;  %2024 = vmatmul.mubr.bf16.gmra.mxu1 %v2093_v31 }
  0x67   :  { %1995 = vmatprep.mubr.bf16.mxu0 %v2078_v32  ;;  %2027 = vmatprep.mubr.bf16.mxu1 %v2094_v33 }
  0x6e   :  { %1996 = vmatmul.mubr.bf16.gmra.mxu0 %v2079_v34  ;;  %2028 = vmatmul.mubr.bf16.gmra.mxu1 %v2095_v35 }
  0x6f   :  { %1999 = vmatprep.mubr.bf16.mxu0 %v2080_v36  ;;  %2031 = vmatprep.mubr.bf16.mxu1 %v2096_v37 }
  0x76   :  { %2000 = vmatmul.mubr.bf16.gmra.mxu0 %v2081_v38  ;;  %2032 = vmatmul.mubr.bf16.gmra.mxu1 %v2097_v39 }
  0xfe   :  { %v1973_v40 = vpop.f32.mrf.mxu0  ;;  %v2225_v41 = vpop.f32.mrf.mxu1 }
  0xff   :  { %v1377_v57 = vmul.f32 %v1973_v40, %v1973_v40 }
 0x100   :  { %v536_v42 = vpop.f32.mrf.mxu0  ;;  %v2227_v43 = vpop.f32.mrf.mxu1 }
 0x101   :  { %v1375_v48 = vmul.f32 %v536_v42, %v536_v42 }
 0x102   :  { %v1974_v44 = vpop.f32.mrf.mxu0  ;;  %v2229_v45 = vpop.f32.mrf.mxu1 }
 0x103   :  { %v1732_v46 = vpack.c.bf16 %v1974_v44, %v1973_v40  ;;  %v1812_v47 = vpack.c.bf16 %v2229_v45, %v2225_v41  ;;  %v1378_v62 = vmul.f32 %v1974_v44, %v1974_v44 }
 0x104   :  { %v539_v49 = vpop.f32.mrf.mxu0  ;;  %v2233_v50 = vpop.f32.mrf.mxu1 }
 0x105   :  { %1884 = vst [vmem:[#allocation8 + $0x8] sm:$0xff] %v1732_v46   ;;  %v1727_v51 = vpack.c.bf16 %v539_v49, %v536_v42  ;;  %v1306_v52 = vadd.f32 %v539_v49, %v536_v42  ;;  %v1376_v53 = vmul.f32 %v539_v49, %v539_v49  ;;  %1900 = vst [vmem:[#allocation8 + $0x88] sm:$0xff] %v1812_v47  }
 0x106   :  { %v1807_v54 = vpack.c.bf16 %v2233_v50, %v2227_v43  ;;  %v1977_v55 = vpop.f32.mrf.mxu0  ;;  %v2237_v56 = vpop.f32.mrf.mxu1 }
 0x107   :  { %1728 = vst [vmem:[#allocation8] sm:$0xff] %v1727_v51   ;;  %v1307_v58 = vadd.f32 %v1973_v40, %v1306_v52  ;;  %v1439_v59 = vadd.f32 %v1376_v53, %v1375_v48  ;;  %v1381_v17 = vmul.f32 %v1977_v55, %v1977_v55 }
 0x108   :  { %1899 = vst [vmem:[#allocation8 + $0x80] sm:$0xff] %v1807_v54   ;;  %v552_v60 = vpop.f32.mrf.mxu0  ;;  %v2239_v61 = vpop.f32.mrf.mxu1 }
 0x109   :  { %v1440_v63 = vadd.f32 %v1439_v59, %v1377_v57  ;;  %v1308_v0 = vadd.f32 %v1974_v44, %v1307_v58  ;;  %v1379_v4 = vmul.f32 %v552_v60, %v552_v60 }
 0x10a   :  { %v1978_v1 = vpop.f32.mrf.mxu0  ;;  %v2241_v2 = vpop.f32.mrf.mxu1 }
 0x10b   :  { %v1309_v3 = vadd.f32 %v1308_v0, %v552_v60  ;;  %v1441_v5 = vadd.f32 %v1440_v63, %v1378_v62  ;;  %v1742_v6 = vpack.c.bf16 %v1978_v1, %v1977_v55  ;;  %v1822_v8 = vpack.c.bf16 %v2241_v2, %v2237_v56 }
 0x10c   :  { %v555_v7 = vpop.f32.mrf.mxu0  ;;  %v2245_v9 = vpop.f32.mrf.mxu1  ;;  %v1382_v22 = vmul.f32 %v1978_v1, %v1978_v1 }
 0x10d   :  { %v1442_v10 = vadd.f32 %v1441_v5, %v1379_v4  ;;  %1886 = vst [vmem:[#allocation8 + $0x18] sm:$0xff] %v1742_v6   ;;  %v1737_v11 = vpack.c.bf16 %v555_v7, %v552_v60  ;;  %v1310_v12 = vadd.f32 %v1309_v3, %v555_v7  ;;  %v1380_v13 = vmul.f32 %v555_v7, %v555_v7 }
 0x10e   :  { %v1981_v14 = vpop.f32.mrf.mxu0  ;;  %1902 = vst [vmem:[#allocation8 + $0x98] sm:$0xff] %v1822_v8   ;;  %v1817_v15 = vpack.c.bf16 %v2245_v9, %v2239_v61  ;;  %v2249_v16 = vpop.f32.mrf.mxu1 }
 0x10f   :  { %1885 = vst [vmem:[#allocation8 + $0x10] sm:$0xff] %v1737_v11   ;;  %v1311_v18 = vadd.f32 %v1977_v55, %v1310_v12  ;;  %v1443_v19 = vadd.f32 %v1442_v10, %v1380_v13  ;;  %v1385_v42 = vmul.f32 %v1981_v14, %v1981_v14 }
 0x110   :  { %v568_v20 = vpop.f32.mrf.mxu0  ;;  %1901 = vst [vmem:[#allocation8 + $0x90] sm:$0xff] %v1817_v15   ;;  %v2251_v21 = vpop.f32.mrf.mxu1 }
 0x111   :  { %v1444_v23 = vadd.f32 %v1443_v19, %v1381_v17  ;;  %v1312_v24 = vadd.f32 %v1978_v1, %v1311_v18  ;;  %v1383_v28 = vmul.f32 %v568_v20, %v568_v20 }
 0x112   :  { %v1982_v25 = vpop.f32.mrf.mxu0  ;;  %v2253_v26 = vpop.f32.mrf.mxu1 }
 0x113   :  { %v1313_v27 = vadd.f32 %v1312_v24, %v568_v20  ;;  %v1445_v29 = vadd.f32 %v1444_v23, %v1382_v22  ;;  %v1752_v30 = vpack.c.bf16 %v1982_v25, %v1981_v14  ;;  %v1832_v32 = vpack.c.bf16 %v2253_v26, %v2249_v16 }
 0x114   :  { %v571_v31 = vpop.f32.mrf.mxu0  ;;  %v2257_v33 = vpop.f32.mrf.mxu1  ;;  %v1386_v49 = vmul.f32 %v1982_v25, %v1982_v25 }
 0x115   :  { %v1446_v34 = vadd.f32 %v1445_v29, %v1383_v28  ;;  %1888 = vst [vmem:[#allocation8 + $0x28] sm:$0xff] %v1752_v30   ;;  %v1747_v35 = vpack.c.bf16 %v571_v31, %v568_v20  ;;  %v1314_v36 = vadd.f32 %v1313_v27, %v571_v31  ;;  %v1384_v37 = vmul.f32 %v571_v31, %v571_v31 }
 0x116   :  { %v1985_v38 = vpop.f32.mrf.mxu0  ;;  %1904 = vst [vmem:[#allocation8 + $0xa8] sm:$0xff] %v1832_v32   ;;  %v1827_v39 = vpack.c.bf16 %v2257_v33, %v2251_v21  ;;  %v2261_v40 = vpop.f32.mrf.mxu1 }
 0x117   :  { %1887 = vst [vmem:[#allocation8 + $0x20] sm:$0xff] %v1747_v35   ;;  %v1315_v44 = vadd.f32 %v1981_v14, %v1314_v36  ;;  %v1447_v46 = vadd.f32 %v1446_v34, %v1384_v37  ;;  %v1389_v8 = vmul.f32 %v1985_v38, %v1985_v38 }
 0x118   :  { %v584_v47 = vpop.f32.mrf.mxu0  ;;  %1903 = vst [vmem:[#allocation8 + $0xa0] sm:$0xff] %v1827_v39   ;;  %v2263_v48 = vpop.f32.mrf.mxu1 }
 0x119   :  { %v1448_v51 = vadd.f32 %v1447_v46, %v1385_v42  ;;  %v1316_v52 = vadd.f32 %v1982_v25, %v1315_v44  ;;  %v1387_v57 = vmul.f32 %v584_v47, %v584_v47 }
 0x11a   :  { %v1986_v53 = vpop.f32.mrf.mxu0  ;;  %v2265_v54 = vpop.f32.mrf.mxu1 }
 0x11b   :  { %v1317_v55 = vadd.f32 %v1316_v52, %v584_v47  ;;  %v1449_v58 = vadd.f32 %v1448_v51, %v1386_v49  ;;  %v1762_v59 = vpack.c.bf16 %v1986_v53, %v1985_v38  ;;  %v1842_v62 = vpack.c.bf16 %v2265_v54, %v2261_v40 }
 0x11c   :  { %v587_v60 = vpop.f32.mrf.mxu0  ;;  %v2269_v63 = vpop.f32.mrf.mxu1  ;;  %v1390_v14 = vmul.f32 %v1986_v53, %v1986_v53 }
 0x11d   :  { %v1450_v0 = vadd.f32 %v1449_v58, %v1387_v57  ;;  %1890 = vst [vmem:[#allocation8 + $0x38] sm:$0xff] %v1762_v59   ;;  %v1757_v1 = vpack.c.bf16 %v587_v60, %v584_v47  ;;  %v1318_v3 = vadd.f32 %v1317_v55, %v587_v60  ;;  %v1388_v4 = vmul.f32 %v587_v60, %v587_v60 }
 0x11e   :  { %v1989_v5 = vpop.f32.mrf.mxu0  ;;  %1906 = vst [vmem:[#allocation8 + $0xb8] sm:$0xff] %v1842_v62   ;;  %v1837_v6 = vpack.c.bf16 %v2269_v63, %v2263_v48  ;;  %v2273_v7 = vpop.f32.mrf.mxu1 }
 0x11f   :  { %1889 = vst [vmem:[#allocation8 + $0x30] sm:$0xff] %v1757_v1   ;;  %v1319_v10 = vadd.f32 %v1985_v38, %v1318_v3  ;;  %v1451_v11 = vadd.f32 %v1450_v0, %v1388_v4  ;;  %v1393_v37 = vmul.f32 %v1989_v5, %v1989_v5 }
 0x120   :  { %v600_v12 = vpop.f32.mrf.mxu0  ;;  %1905 = vst [vmem:[#allocation8 + $0xb0] sm:$0xff] %v1837_v6   ;;  %v2275_v13 = vpop.f32.mrf.mxu1 }
 0x121   :  { %v1452_v15 = vadd.f32 %v1451_v11, %v1389_v8  ;;  %v1320_v17 = vadd.f32 %v1986_v53, %v1319_v10  ;;  %v1391_v22 = vmul.f32 %v600_v12, %v600_v12 }
 0x122   :  { %v1990_v18 = vpop.f32.mrf.mxu0  ;;  %v2277_v19 = vpop.f32.mrf.mxu1 }
 0x123   :  { %v1321_v20 = vadd.f32 %v1320_v17, %v600_v12  ;;  %v1453_v23 = vadd.f32 %v1452_v15, %v1390_v14  ;;  %v1772_v24 = vpack.c.bf16 %v1990_v18, %v1989_v5  ;;  %v1852_v27 = vpack.c.bf16 %v2277_v19, %v2273_v7 }
 0x124   :  { %v603_v25 = vpop.f32.mrf.mxu0  ;;  %v2281_v28 = vpop.f32.mrf.mxu1  ;;  %v1394_v46 = vmul.f32 %v1990_v18, %v1990_v18 }
 0x125   :  { %v1454_v29 = vadd.f32 %v1453_v23, %v1391_v22  ;;  %1892 = vst [vmem:[#allocation8 + $0x48] sm:$0xff] %v1772_v24   ;;  %v1767_v30 = vpack.c.bf16 %v603_v25, %v600_v12  ;;  %v1322_v31 = vadd.f32 %v1321_v20, %v603_v25  ;;  %v1392_v32 = vmul.f32 %v603_v25, %v603_v25 }
 0x126   :  { %v1993_v34 = vpop.f32.mrf.mxu0  ;;  %1908 = vst [vmem:[#allocation8 + $0xc8] sm:$0xff] %v1852_v27   ;;  %v1847_v35 = vpack.c.bf16 %v2281_v28, %v2275_v13  ;;  %v2285_v36 = vpop.f32.mrf.mxu1 }
 0x127   :  { %1891 = vst [vmem:[#allocation8 + $0x40] sm:$0xff] %v1767_v30   ;;  %v1323_v38 = vadd.f32 %v1989_v5, %v1322_v31  ;;  %v1455_v39 = vadd.f32 %v1454_v29, %v1392_v32  ;;  %v1397_v10 = vmul.f32 %v1993_v34, %v1993_v34 }
 0x128   :  { %v616_v42 = vpop.f32.mrf.mxu0  ;;  %1907 = vst [vmem:[#allocation8 + $0xc0] sm:$0xff] %v1847_v35   ;;  %v2287_v44 = vpop.f32.mrf.mxu1 }
 0x129   :  { %v1456_v47 = vadd.f32 %v1455_v39, %v1393_v37  ;;  %v1324_v49 = vadd.f32 %v1990_v18, %v1323_v38  ;;  %v1395_v55 = vmul.f32 %v616_v42, %v616_v42 }
 0x12a   :  { %v1994_v51 = vpop.f32.mrf.mxu0  ;;  %v2289_v52 = vpop.f32.mrf.mxu1 }
 0x12b   :  { %v1325_v53 = vadd.f32 %v1324_v49, %v616_v42  ;;  %v1457_v57 = vadd.f32 %v1456_v47, %v1394_v46  ;;  %v1782_v58 = vpack.c.bf16 %v1994_v51, %v1993_v34  ;;  %v1862_v60 = vpack.c.bf16 %v2289_v52, %v2285_v36 }
 0x12c   :  { %v619_v59 = vpop.f32.mrf.mxu0  ;;  %v2293_v62 = vpop.f32.mrf.mxu1  ;;  %v1398_v17 = vmul.f32 %v1994_v51, %v1994_v51 }
 0x12d   :  { %v1458_v0 = vadd.f32 %v1457_v57, %v1395_v55  ;;  %1894 = vst [vmem:[#allocation8 + $0x58] sm:$0xff] %v1782_v58   ;;  %v1777_v1 = vpack.c.bf16 %v619_v59, %v616_v42  ;;  %v1326_v3 = vadd.f32 %v1325_v53, %v619_v59  ;;  %v1396_v4 = vmul.f32 %v619_v59, %v619_v59 }
 0x12e   :  { %v1997_v5 = vpop.f32.mrf.mxu0  ;;  %1910 = vst [vmem:[#allocation8 + $0xd8] sm:$0xff] %v1862_v60   ;;  %v1857_v6 = vpack.c.bf16 %v2293_v62, %v2287_v44  ;;  %v2297_v8 = vpop.f32.mrf.mxu1 }
 0x12f   :  { %1893 = vst [vmem:[#allocation8 + $0x50] sm:$0xff] %v1777_v1   ;;  %v1327_v11 = vadd.f32 %v1993_v34, %v1326_v3  ;;  %v1459_v12 = vadd.f32 %v1458_v0, %v1396_v4  ;;  %v1401_v47 = vmul.f32 %v1997_v5, %v1997_v5 }
 0x130   :  { %v632_v14 = vpop.f32.mrf.mxu0  ;;  %1909 = vst [vmem:[#allocation8 + $0xd0] sm:$0xff] %v1857_v6   ;;  %v2299_v15 = vpop.f32.mrf.mxu1 }
 0x131   :  { %v1460_v18 = vadd.f32 %v1459_v12, %v1397_v10  ;;  %v1328_v20 = vadd.f32 %v1994_v51, %v1327_v11  ;;  %v1399_v25 = vmul.f32 %v632_v14, %v632_v14 }
 0x132   :  { %v1998_v22 = vpop.f32.mrf.mxu0  ;;  %v2301_v23 = vpop.f32.mrf.mxu1 }
 0x133   :  { %v1329_v24 = vadd.f32 %v1328_v20, %v632_v14  ;;  %v1461_v27 = vadd.f32 %v1460_v18, %v1398_v17  ;;  %v1792_v29 = vpack.c.bf16 %v1998_v22, %v1997_v5  ;;  %v1872_v31 = vpack.c.bf16 %v2301_v23, %v2297_v8 }
 0x134   :  { %v635_v30 = vpop.f32.mrf.mxu0  ;;  %v2305_v32 = vpop.f32.mrf.mxu1  ;;  %v1402_v57 = vmul.f32 %v1998_v22, %v1998_v22 }
 0x135   :  { %v1462_v34 = vadd.f32 %v1461_v27, %v1399_v25  ;;  %1896 = vst [vmem:[#allocation8 + $0x68] sm:$0xff] %v1792_v29   ;;  %v1787_v35 = vpack.c.bf16 %v635_v30, %v632_v14  ;;  %v1330_v37 = vadd.f32 %v1329_v24, %v635_v30  ;;  %v1400_v38 = vmul.f32 %v635_v30, %v635_v30 }
 0x136   :  { %v2001_v39 = vpop.f32.mrf.mxu0  ;;  %1912 = vst [vmem:[#allocation8 + $0xe8] sm:$0xff] %v1872_v31   ;;  %v1867_v42 = vpack.c.bf16 %v2305_v32, %v2299_v15  ;;  %v2309_v46 = vpop.f32.mrf.mxu1 }
 0x137   :  { %1895 = vst [vmem:[#allocation8 + $0x60] sm:$0xff] %v1787_v35   ;;  %v1331_v49 = vadd.f32 %v1997_v5, %v1330_v37  ;;  %v1463_v51 = vadd.f32 %v1462_v34, %v1400_v38 }
 0x138   :  { %v648_v53 = vpop.f32.mrf.mxu0  ;;  %1911 = vst [vmem:[#allocation8 + $0xe0] sm:$0xff] %v1867_v42   ;;  %v2311_v55 = vpop.f32.mrf.mxu1 }
 0x139   :  { %v1464_v58 = vadd.f32 %v1463_v51, %v1401_v47  ;;  %v1332_v59 = vadd.f32 %v1998_v22, %v1331_v49  ;;  %v1403_v3 = vmul.f32 %v648_v53, %v648_v53  ;;  %v1405_v22 = vmul.f32 %v2001_v39, %v2001_v39 }
 0x13a   :  { %v2002_v60 = vpop.f32.mrf.mxu0  ;;  %v2313_v0 = vpop.f32.mrf.mxu1 }
 0x13b   :  { %v1333_v1 = vadd.f32 %v1332_v59, %v648_v53  ;;  %v1465_v4 = vadd.f32 %v1464_v58, %v1402_v57  ;;  %v1802_v6 = vpack.c.bf16 %v2002_v60, %v2001_v39  ;;  %v1882_v5 = vpack.c.bf16 %v2313_v0, %v2309_v46 }
 0x13c   :  { %v651_v10 = vpop.f32.mrf.mxu0  ;;  %v2317_v11 = vpop.f32.mrf.mxu1  ;;  %v1406_v27 = vmul.f32 %v2002_v60, %v2002_v60 }
 0x13d   :  { %v1466_v12 = vadd.f32 %v1465_v4, %v1403_v3  ;;  %1898 = vst [vmem:[#allocation8 + $0x78] sm:$0xff] %v1802_v6   ;;  %v1797_v14 = vpack.c.bf16 %v651_v10, %v648_v53  ;;  %v1334_v17 = vadd.f32 %v1333_v1, %v651_v10  ;;  %v1404_v18 = vmul.f32 %v651_v10, %v651_v10 }
 0x13e   :  { %1914 = vst [vmem:[#allocation8 + $0xf8] sm:$0xff] %v1882_v5   ;;  %v1877_v20 = vpack.c.bf16 %v2317_v11, %v2311_v55 }
 0x13f   :  { %1897 = vst [vmem:[#allocation8 + $0x70] sm:$0xff] %v1797_v14   ;;  %v1335_v24 = vadd.f32 %v2001_v39, %v1334_v17  ;;  %v1467_v25 = vadd.f32 %v1466_v12, %v1404_v18 }
 0x140   :  { %1913 = vst [vmem:[#allocation8 + $0xf0] sm:$0xff] %v1877_v20  }
 0x141   :  { %v1336_v29 = vadd.f32 %v2002_v60, %v1335_v24  ;;  %v1468_v30 = vadd.f32 %v1467_v25, %v1405_v22 }
 0x142   :  { %2149 = shalt.err (!%p2146_p0)
}
 0x143   :  { %1533 = dma.vmem_to_hbm [thread:$0]  %s1528_s1, 4096, %s2428_s2, [#allocation5], %s2187_s15, %s2187_s15, %s2188_s16   ;;  %v1407_v31 = vmul.f32 %v2227_v43, %v2227_v43  ;;  %v1469_v34 = vadd.f32 %v1468_v30, %v1406_v27  ;;  %v1337_v35 = vadd.f32 %v1336_v29, %v2227_v43  ;;  %v1408_v38 = vmul.f32 %v2233_v50, %v2233_v50 }
 0x144   :  { %v1409_v42 = vmul.f32 %v2225_v41, %v2225_v41  ;;  %v1410_v51 = vmul.f32 %v2229_v45, %v2229_v45  ;;  %v1411_v58 = vmul.f32 %v2239_v61, %v2239_v61  ;;  %v1412_v1 = vmul.f32 %v2245_v9, %v2245_v9  ;;  %s2192_s2 = smov [#allocation9]  }
 0x145   :  { %v1338_v37 = vadd.f32 %v1337_v35, %v2233_v50  ;;  %v1470_v39 = vadd.f32 %v1469_v34, %v1407_v31  ;;  %v1415_v5 = vmul.f32 %v2251_v21, %v2251_v21  ;;  %v1416_v17 = vmul.f32 %v2257_v33, %v2257_v33  ;;  %s1540_s27 = sshll.u32 %s2192_s2, 4  ;;  %s1541_s27 = int_to_ptr.vmem [resolvable:$true] %s1540_s27 }
 0x146   :  { %v1419_v25 = vmul.f32 %v2263_v48, %v2263_v48  ;;  %v1420_v30 = vmul.f32 %v2269_v63, %v2269_v63  ;;  %s2158_s28 = scalar_lea.vmem %s1541_s27, 128  ;;  %p2163_p2 = scmp.lt.s32.totalorder %s1541_s27, %s1541_s27 }
 0x147   :  { %v1339_v47 = vadd.f32 %v2225_v41, %v1338_v37  ;;  %v1471_v49 = vadd.f32 %v1470_v39, %v1408_v38  ;;  %v1413_v41 = vmul.f32 %v2237_v56, %v2237_v56  ;;  %v1423_v38 = vmul.f32 %v2275_v13, %v2275_v13  ;;  %p2159_p1 = scmp.ne.s32.totalorder %s1541_s27, %s2158_s28  ;;  %p2164_p3 = scmp.lt.s32.totalorder %s2158_s28, %s2158_s28 }
 0x149   :  { %v1472_v53 = vadd.f32 %v1471_v49, %v1409_v42  ;;  %v1340_v57 = vadd.f32 %v2229_v45, %v1339_v47  ;;  %v1414_v45 = vmul.f32 %v2241_v2, %v2241_v2  ;;  %v1424_v47 = vmul.f32 %v2281_v28, %v2281_v28  ;;  %p2165_p4 = por %p2164_p3, %p2163_p2 }
 0x14b   :  { %v1341_v43 = vadd.f32 %v1340_v57, %v2239_v61  ;;  %v1473_v59 = vadd.f32 %v1472_v53, %v1410_v51  ;;  %p2166_p5 = pnand %p2165_p4, %p2159_p1 }
 0x14d   :  { %v1474_v50 = vadd.f32 %v1473_v59, %v1411_v58  ;;  %v1342_v60 = vadd.f32 %v1341_v43, %v2245_v9  ;;  %v1427_v43 = vmul.f32 %v2287_v44, %v2287_v44 }
 0x14f   :  { %v1343_v3 = vadd.f32 %v2237_v56, %v1342_v60  ;;  %v1475_v4 = vadd.f32 %v1474_v50, %v1412_v1  ;;  %v1417_v56 = vmul.f32 %v2249_v16, %v2249_v16  ;;  %v1428_v50 = vmul.f32 %v2293_v62, %v2293_v62 }
 0x151   :  { %v1476_v6 = vadd.f32 %v1475_v4, %v1413_v41  ;;  %v1344_v10 = vadd.f32 %v2241_v2, %v1343_v3  ;;  %v1418_v2 = vmul.f32 %v2253_v26, %v2253_v26  ;;  %v1431_v4 = vmul.f32 %v2299_v15, %v2299_v15 }
 0x153   :  { %v1345_v61 = vadd.f32 %v1344_v10, %v2251_v21  ;;  %v1477_v12 = vadd.f32 %v1476_v6, %v1414_v45  ;;  %v1432_v10 = vmul.f32 %v2305_v32, %v2305_v32 }
 0x155   :  { %v1478_v14 = vadd.f32 %v1477_v12, %v1415_v5  ;;  %v1346_v9 = vadd.f32 %v1345_v61, %v2257_v33 }
 0x157   :  { %v1347_v18 = vadd.f32 %v2249_v16, %v1346_v9  ;;  %v1479_v20 = vadd.f32 %v1478_v14, %v1416_v17  ;;  %v1421_v16 = vmul.f32 %v2261_v40, %v2261_v40  ;;  %v1435_v9 = vmul.f32 %v2311_v55, %v2311_v55 }
 0x159   :  { %v1480_v22 = vadd.f32 %v1479_v20, %v1417_v56  ;;  %v1348_v24 = vadd.f32 %v2253_v26, %v1347_v18  ;;  %v1422_v26 = vmul.f32 %v2265_v54, %v2265_v54  ;;  %v1436_v18 = vmul.f32 %v2317_v11, %v2317_v11 }
 0x15b   :  { %v1349_v21 = vadd.f32 %v1348_v24, %v2263_v48  ;;  %v1481_v27 = vadd.f32 %v1480_v22, %v1418_v2 }
 0x15d   :  { %v1482_v29 = vadd.f32 %v1481_v27, %v1419_v25  ;;  %v1350_v33 = vadd.f32 %v1349_v21, %v2269_v63  ;;  %v1508_v25 = vlaneseq }
 0x15f   :  { %v1351_v31 = vadd.f32 %v2261_v40, %v1350_v33  ;;  %v1483_v34 = vadd.f32 %v1482_v29, %v1420_v30  ;;  %v1425_v40 = vmul.f32 %v2273_v7, %v2273_v7 }
 0x161   :  { %v1484_v35 = vadd.f32 %v1483_v34, %v1421_v16  ;;  %v1352_v37 = vadd.f32 %v2265_v54, %v1351_v31  ;;  %v1426_v54 = vmul.f32 %v2277_v19, %v2277_v19 }
 0x163   :  { %v1353_v48 = vadd.f32 %v1352_v37, %v2275_v13  ;;  %v1485_v39 = vadd.f32 %v1484_v35, %v1422_v26  ;;  %v2191_v37 = vmov 0.0  }
 0x165   :  { %v1486_v42 = vadd.f32 %v1485_v39, %v1423_v38  ;;  %v1354_v63 = vadd.f32 %v1353_v48, %v2281_v28 }
 0x167   :  { %v1355_v49 = vadd.f32 %v2273_v7, %v1354_v63  ;;  %v1487_v51 = vadd.f32 %v1486_v42, %v1424_v47  ;;  %v1429_v7 = vmul.f32 %v2285_v36, %v2285_v36 }
 0x169   :  { %v1488_v53 = vadd.f32 %v1487_v51, %v1425_v40  ;;  %v1356_v57 = vadd.f32 %v2277_v19, %v1355_v49  ;;  %v1430_v19 = vmul.f32 %v2289_v52, %v2289_v52 }
 0x16b   :  { %v1357_v13 = vadd.f32 %v1356_v57, %v2287_v44  ;;  %v1489_v58 = vadd.f32 %v1488_v53, %v1426_v54 }
 0x16d   :  { %v1490_v59 = vadd.f32 %v1489_v58, %v1427_v43  ;;  %v1358_v28 = vadd.f32 %v1357_v13, %v2293_v62 }
 0x16f   :  { %v1359_v60 = vadd.f32 %v2285_v36, %v1358_v28  ;;  %v1491_v1 = vadd.f32 %v1490_v59, %v1428_v50  ;;  %v1433_v36 = vmul.f32 %v2297_v8, %v2297_v8 }
 0x171   :  { %v1492_v41 = vadd.f32 %v1491_v1, %v1429_v7  ;;  %v1360_v3 = vadd.f32 %v2289_v52, %v1359_v60  ;;  %v1434_v52 = vmul.f32 %v2301_v23, %v2301_v23 }
 0x173   :  { %v1361_v44 = vadd.f32 %v1360_v3, %v2299_v15  ;;  %v1493_v45 = vadd.f32 %v1492_v41, %v1430_v19 }
 0x175   :  { %v1494_v6 = vadd.f32 %v1493_v45, %v1431_v4  ;;  %v1362_v62 = vadd.f32 %v1361_v44, %v2305_v32 }
 0x177   :  { %v1363_v61 = vadd.f32 %v2297_v8, %v1362_v62  ;;  %v1495_v5 = vadd.f32 %v1494_v6, %v1432_v10  ;;  %v1437_v8 = vmul.f32 %v2309_v46, %v2309_v46 }
 0x179   :  { %v1496_v12 = vadd.f32 %v1495_v5, %v1433_v36  ;;  %v1364_v14 = vadd.f32 %v2301_v23, %v1363_v61  ;;  %v1438_v23 = vmul.f32 %v2313_v0, %v2313_v0 }
 0x17b   :  { %v1365_v15 = vadd.f32 %v1364_v14, %v2311_v55  ;;  %v1497_v17 = vadd.f32 %v1496_v12, %v1434_v52 }
 0x17d   :  { %v1498_v56 = vadd.f32 %v1497_v17, %v1435_v9  ;;  %v1366_v32 = vadd.f32 %v1365_v15, %v2317_v11  ;;  %v1509_v11 = vshrl.u32 %v1508_v25, 7 }
 0x17f   :  { %v1367_v20 = vadd.f32 %v2309_v46, %v1366_v32  ;;  %v1499_v2 = vadd.f32 %v1498_v56, %v1436_v18  ;;  %vm1510_vm0 = vcmp.eq.s32.totalorder %v1509_v11, 0  ;;  %vm1514_vm1 = vcmp.eq.s32.totalorder %v1509_v11, 1 }
 0x180   :  { %v1658_v48 = vsel %vm1510_vm0, 1.0, %v2191_v37 }
 0x181   :  { %v1368_v22 = vadd.f32 %v2313_v0, %v1367_v20  ;;  %v1500_v24 = vadd.f32 %v1499_v2, %v1437_v8  ;;  %v1659_v0 = vsel %vm1514_vm1, 1.0, %v2191_v37 }
 0x183   :  { %v1369_v55 = vrot.slane %v1368_v22, 4  ;;  %v1501_v21 = vadd.f32 %v1500_v24, %v1438_v23 }
 0x185   :  { %v1370_v27 = vadd.f32 %v1369_v55, %v1368_v22  ;;  %v1502_v29 = vrot.slane %v1501_v21, 4 }
 0x187   :  { %v1371_v33 = vrot.slane %v1370_v27, 2  ;;  %v1503_v30 = vadd.f32 %v1502_v29, %v1501_v21 }
 0x189   :  { %v1372_v16 = vadd.f32 %v1371_v33, %v1370_v27  ;;  %v1504_v31 = vrot.slane %v1503_v30, 2 }
 0x18b   :  { %v1373_v34 = vrot.slane %v1372_v16, 1  ;;  %v1505_v26 = vadd.f32 %v1504_v31, %v1503_v30 }
 0x18d   :  { %v1374_v46 = vadd.f32 %v1373_v34, %v1372_v16  ;;  %v1506_v35 = vrot.slane %v1505_v26, 1 }
 0x18f   :  { %v1507_v38 = vadd.f32 %v1506_v35, %v1505_v26  ;;  %v1513_v39 = vmul.f32 %v1658_v48, %v1374_v46 }
 0x191   :  { %v1517_v42 = vmul.f32 %v1659_v0, %v1507_v38 }
 0x193   :  { %v1518_v63 = vadd.f32 %v1517_v42, %v1513_v39 }
 0x195   :  { %1521 = vst [vmem:[#allocation9] sm:$0xff] %v1518_v63 }
 0x196   :  { %2169 = shalt.err (!%p2166_p5)
}
 0x197   :  { %1543 = dma.vmem_to_hbm [thread:$0]  %s1541_s27, 128, %s2429_s3, [#allocation10]  }
 0x198   :  { %2182 = dma.done.wait [#allocation5], 4096  }
 0x199   :  { %2183 = vsyncadd [#allocation5], 4294963200 }
 0x19a   :  { %2184 = dma.done.wait [#allocation10], 128  }
 0x19b   :  { %2185 = vsyncadd [#allocation10], 4294967168 }
 0x19c   :  { %1550 = vsyncpa [#allocation4], 1 }
 0x19d   :  { %1551 = vsyncpa [#allocation7], 1 }
 0x19e   :  { %1552 = vsyncpa [#allocation5], 1 }
 0x19f   :  { %1553 = vsyncpa [#allocation10], 1 }

</bundles_post_ra>
